<compile_context>
chip_gen: v5e
topology: v5e:2x2
jax: 0.10.0
libtpu: 0.0.40
codegen_flags: <defaults>
</compile_context>

<pallas_src>
import jax
import jax.numpy as jnp
from jax.experimental import pallas as pl
from jax.experimental.pallas import tpu as pltpu


def _logreg_kernel(x_ref, w_ref, b_ref, o_ref):
    # x_ref: (TB, D) VMEM tile; w_ref: (1, D) VMEM resident, lane-dense;
    # b_ref: (1,) SMEM scalar; o_ref: (TB, 1) VMEM output block.
    x = x_ref[...]                                   # (TB, D)
    w = w_ref[...]                                   # (1, D) broadcast over rows
    # N=1 GEMV: VPU multiply + XLU cross-lane reduce (keepdims -> no relayout).
    logits = jnp.sum(x * w, axis=-1, keepdims=True) + b_ref[0]   # (TB, 1)
    o_ref[...] = jax.nn.sigmoid(logits).astype(o_ref.dtype)


def _round_up(x, m):
    return ((x + m - 1) // m) * m


def _choose_block_b(B, D, block_b=None):
    """Pick a batch tile: ~2 MiB of f32 x per tile, >=2 tiles when possible."""
    if block_b is None:
        block_b = max(8, min(4096, (2 * 1024 * 1024) // (D * 4)))
    # Cap so the grid has >= 2 steps (megacore sharding on v7x; no-op elsewhere).
    tb = min(block_b, _round_up(pl.cdiv(B, 2), 8))
    tb = max(8, (tb // 8) * 8)                       # (8, 128) sublane rule
    if tb >= B:
        tb = B                                       # full-extent block is always legal
    return tb


def logistic_regression(x, weight, bias, *, block_b=None):
    """Forward of nn.Linear(D, 1) + sigmoid.

    x: (B, D) f32, weight: (1, D) f32 (PyTorch layout), bias: (1,) f32.
    Returns (B, 1) f32.

    VMEM: double-buffered x is 2*TB*D*4 B <= ~4.5 MiB with the default tile
    target, comfortably inside the scoped VMEM default on v5e/v6e/v7x.
    """
    B, D = x.shape
    TB = _choose_block_b(B, D, block_b)
    num_tiles = pl.cdiv(B, TB)                       # ragged last block handled by Pallas

    x = x.astype(jnp.float32)
    w = weight.reshape(1, D).astype(jnp.float32)     # lane-major, no transpose
    b = bias.reshape(1).astype(jnp.float32)          # scalar -> SMEM

    out = pl.pallas_call(
        _logreg_kernel,
        out_shape=jax.ShapeDtypeStruct((B, 1), jnp.float32),
        grid_spec=pltpu.PrefetchScalarGridSpec(
            num_scalar_prefetch=0,
            grid=(num_tiles,),
            in_specs=[
                pl.BlockSpec((TB, D), lambda i: (i, 0)),            # x batch tile
                pl.BlockSpec((1, D), lambda i: (0, 0)),             # weight, resident
                pl.BlockSpec(memory_space=pltpu.MemorySpace.SMEM),  # bias scalar
            ],
            out_specs=pl.BlockSpec((TB, 1), lambda i: (i, 0)),      # (TB,1) rows out
        ),
        compiler_params=pltpu.CompilerParams(
            # Independent batch tiles -> megacore sharding on multi-TC chips.
            dimension_semantics=("parallel",)),
        cost_estimate=pl.CostEstimate(
            flops=2 * B * D,
            transcendentals=B,
            bytes_accessed=B * D * 4 + D * 4 + B * 4),
    )(x, w, b)
    return out


def _reference(x, weight, bias):
    return jax.nn.sigmoid(x @ weight.T + bias)


if __name__ == "__main__":
    key = jax.random.PRNGKey(0)
    kx, kw, kb, kx2, kx3 = jax.random.split(key, 5)

    # --- primary (toy) shapes consistent with the module ---
    batch, input_dim = 8, 32
    x = jax.random.normal(kx, (batch, input_dim), dtype=jnp.float32)
    bound = 1.0 / jnp.sqrt(input_dim)
    weight = jax.random.uniform(kw, (1, input_dim), minval=-bound, maxval=bound,
                                dtype=jnp.float32)
    bias = jax.random.uniform(kb, (1,), minval=-bound, maxval=bound,
                              dtype=jnp.float32)
    out = jax.block_until_ready(logistic_regression(x, weight, bias))
    ref = _reference(x, weight, bias)
    assert out.shape == (batch, 1)
    assert jnp.allclose(out, ref, atol=1e-5, rtol=1e-5)

    # --- ragged batch: exercises the unpadded final-partial-block path ---
    B2, D2 = 1000, 128
    x2 = jax.random.normal(kx2, (B2, D2), dtype=jnp.float32)
    bound2 = 1.0 / jnp.sqrt(D2)
    w2 = jax.random.uniform(kw, (1, D2), minval=-bound2, maxval=bound2,
                            dtype=jnp.float32)
    b2 = jax.random.uniform(kb, (1,), minval=-bound2, maxval=bound2,
                            dtype=jnp.float32)
    out2 = jax.block_until_ready(logistic_regression(x2, w2, b2))
    ref2 = _reference(x2, w2, b2)
    assert out2.shape == (B2, 1)
    assert jnp.allclose(out2, ref2, atol=1e-5, rtol=1e-5)

    # --- evenly divisible multi-tile path ---
    B3, D3 = 1024, 256
    x3 = jax.random.normal(kx3, (B3, D3), dtype=jnp.float32)
    bound3 = 1.0 / jnp.sqrt(D3)
    w3 = jax.random.uniform(kw, (1, D3), minval=-bound3, maxval=bound3,
                            dtype=jnp.float32)
    b3 = jax.random.uniform(kb, (1,), minval=-bound3, maxval=bound3,
                            dtype=jnp.float32)
    out3 = jax.block_until_ready(logistic_regression(x3, w3, b3))
    ref3 = _reference(x3, w3, b3)
    assert out3.shape == (B3, 1)
    assert jnp.allclose(out3, ref3, atol=1e-5, rtol=1e-5)

    print("KERNEL_OK")
</pallas_src>

<mosaic_0001>
module attributes {stable_mosaic.version = 11 : i64} {
  func.func @_logreg_kernel(%arg0: i32, %arg1: memref<8x32xf32, #tpu.memory_space<vmem>>, %arg2: memref<1x32xf32, #tpu.memory_space<vmem>>, %arg3: memref<1xf32, #tpu.memory_space<smem>>, %arg4: memref<8x1xf32, #tpu.memory_space<vmem>>) attributes {dimension_semantics = [#tpu.dimension_semantics<parallel>], iteration_bounds = array<i64: 1>, scalar_prefetch = 0 : i64, scratch_operands = 0 : i64, tpu.core_type = #tpu.core_type<tc>, window_params = [{transform_indices = @transform_0, window_bounds = array<i64: 8, 32>}, {pipeline_mode = #tpu.pipeline_mode<synchronous>, transform_indices = @transform_1, window_bounds = array<i64: 1, 32>}, {transform_indices = @transform_2, window_bounds = array<i64: 1>}, {transform_indices = @transform_3, window_bounds = array<i64: 8, 1>}]} {
    %c0 = arith.constant 0 : index
    %c0_0 = arith.constant 0 : index
    %0 = vector.load %arg1[%c0, %c0_0] : memref<8x32xf32, #tpu.memory_space<vmem>>, vector<8x32xf32>
    %c0_1 = arith.constant 0 : index
    %c0_2 = arith.constant 0 : index
    %1 = vector.load %arg2[%c0_1, %c0_2] : memref<1x32xf32, #tpu.memory_space<vmem>>, vector<1x32xf32>
    %2 = vector.broadcast %1 : vector<1x32xf32> to vector<8x32xf32>
    %3 = arith.mulf %0, %2 : vector<8x32xf32>
    %cst = arith.constant dense<0.000000e+00> : vector<8xf32>
    %4 = vector.multi_reduction <add>, %3, %cst [1] : vector<8x32xf32> to vector<8xf32>
    %5 = vector.shape_cast %4 : vector<8xf32> to vector<8x1xf32>
    %c0_3 = arith.constant 0 : index
    %6 = memref.load %arg3[%c0_3] : memref<1xf32, #tpu.memory_space<smem>>
    %7 = vector.broadcast %6 : f32 to vector<8x1xf32>
    %8 = arith.addf %5, %7 : vector<8x1xf32>
    %9 = arith.negf %8 : vector<8x1xf32>
    %10 = math.exp %9 : vector<8x1xf32>
    %cst_4 = arith.constant 1.000000e+00 : f32
    %11 = vector.broadcast %cst_4 : f32 to vector<8x1xf32>
    %12 = arith.addf %11, %10 : vector<8x1xf32>
    %13 = arith.divf %11, %12 : vector<8x1xf32>
    %c0_5 = arith.constant 0 : index
    %c0_6 = arith.constant 0 : index
    %14 = vector.load %arg4[%c0_5, %c0_6] : memref<8x1xf32, #tpu.memory_space<vmem>>, vector<8x1xf32>
    tpu.vector_store %arg4[%c0_5, %c0_6], %13 {strides = array<i32>} : memref<8x1xf32, #tpu.memory_space<vmem>>, vector<8x1xf32>,
    return
  }
  func.func @transform_0(%arg0: i32) -> (i32, i32) {
    %c0_i32 = arith.constant 0 : i32
    %c0_i32_0 = arith.constant 0 : i32
    return %arg0, %c0_i32 : i32, i32
  }
  func.func @transform_1(%arg0: i32) -> (i32, i32) {
    %c0_i32 = arith.constant 0 : i32
    %c0_i32_0 = arith.constant 0 : i32
    %c0_i32_1 = arith.constant 0 : i32
    return %c0_i32, %c0_i32_0 : i32, i32
  }
  func.func @transform_2(%arg0: i32) -> i32 {
    %c0_i32 = arith.constant 0 : i32
    %c0_i32_0 = arith.constant 0 : i32
    return %c0_i32 : i32
  }
  func.func @transform_3(%arg0: i32) -> (i32, i32) {
    %c0_i32 = arith.constant 0 : i32
    %c0_i32_0 = arith.constant 0 : i32
    return %arg0, %c0_i32 : i32, i32
  }
}

</mosaic_0001>

<bundles_post_ra>
// kernel: tpu_custom_call.1
= control target key start
LH: loop header
LB: loop body
LE: loop exit
PB: predicated region body
PF: predicated region fallthrough
CT: control target
= control target key end

     0   :  { %9 = vsyncpa [#allocation4], 0  ;;  %s101_s15 = smov [#allocation3]   ;;  %s134_s0 = inlined_call_operand.hbm [shape: f32[8,32], index: 0, kind: input, shape index: {}]   ;;  %s135_s1 = inlined_call_operand.vmem [shape: f32[1,32], index: 1, kind: input, shape index: {}]   ;;  %s136_s2 = inlined_call_operand.<no memory space> [shape: f32[1], index: 2, kind: input, shape index: {}]   ;;  %s137_s3 = inlined_call_operand.vmem [shape: f32[8,1], index: 3, kind: output, shape index: {}]  }
   0x1   :  { %s15_s14 = sshll.u32 %s134_s0, 4  ;;  %s17_s16 = sshll.u32 %s101_s15, 4  ;;  %s16_s14 = int_to_ptr.hbm [resolvable:$true] %s15_s14  ;;  %s18_s16 = int_to_ptr.vmem [resolvable:$true] %s17_s16 }
   0x2   :  { %20 = dma.hbm_to_vmem [thread:$0]  %s16_s14, 128, %s18_s16, [#allocation4]  }
   0x3   :  { %99 = dma.done.wait [#allocation4], 128  }
   0x4   :  { %100 = vsyncadd [#allocation4], 4294967168  ;;  %v29_v0 = vld [vmem:[#allocation3] sm:$0xff]  ;;  %vm35_vm0 = vcmask 261120   ;;  %v40_v4 = vstv %s136_s2  ;;  %vm61_vm4 = vcmask 7168  }
   0x5   :  { %v70_v1 = vld [vmem:[%s135_s1] ss:$0 sm:$0xff] }
   0x6   :  { %v34_v2 = vmul.f32 %v70_v1, %v29_v0 }
   0x8   :  { %v36_v3 = vsel %vm35_vm0, %v34_v2, 0.0 }
   0x9   :  { %37 = vadd.xlane.f32.xlu0 %v36_v3 }
  0x7c   :  { %v38_v5 = vpop.xlane.xlu0 %37 }
  0x7d   :  { %v41_v6 = vadd.f32 %v40_v4, %v38_v5 }
  0x7f   :  { %v68_v7 = vmul.f32 -1.442695, %v41_v6 }
  0x81   :  { %71 = vpow2.f32 %v68_v7 }
  0x87   :  { %v72_v8 = vpop.eup %71 }
  0x88   :  { %v45_v9 = vadd.f32 1.0, %v72_v8 }
  0x8a   :  { %73 = vrcp.f32 %v45_v9  ;;  %v57_v13 = vand.u32 2147483648, %v45_v9  ;;  %v55_v15 = vand.u32 2147483647, %v45_v9  ;;  %vm51_vm2 = vweird.f32 %v45_v9 }
  0x8c   :  { %v58_v17 = vor.u32 1.1754944e-38, %v57_v13  ;;  %vm56_vm5 = vcmp.eq.f32.partialorder %v55_v15, 8.507059e+37 }
  0x90   :  { %v74_v10 = vpop.eup %73 }
  0x91   :  { %v47_v11 = vmul.f32 %v74_v10, %v45_v9  ;;  %vm52_vm1 = vweird.f32 %v74_v10 }
  0x92   :  { %vm53_vm3 = vmor %vm51_vm2, %vm52_vm1 }
  0x93   :  { %v48_v12 = vsub.f32 1.0, %v47_v11 }
  0x95   :  { %v49_v14 = vmul.f32 %v74_v10, %v48_v12 }
  0x97   :  { %v50_v16 = vadd.f32 %v74_v10, %v49_v14 }
  0x99   :  { %v54_v18 = vsel %vm53_vm3, %v74_v10, %v50_v16 }
  0x9a   :  { %v59_v19 = vsel %vm56_vm5, %v58_v17, %v54_v18 }
  0x9b   :  { %62 = vst.msk [vmem:[%s137_s3] sm:$0xff] %vm61_vm4, %v59_v19 }
  0x9c   :  { %67 = vsyncpa [#allocation4], 1 }

</bundles_post_ra>
